<compile_context>
chip_gen: v5e
topology: v5e:2x2
jax: 0.10.0
libtpu: 0.0.40
codegen_flags: <defaults>
</compile_context>

<pallas_src>
import jax
import jax.numpy as jnp
from jax.experimental import pallas as pl
from jax.experimental.pallas import tpu as pltpu

LANE = 128  # TPU lane width


def make_circle_kernel(chunk):
    """Build the kernel with a static row-chunk size (must divide tile_m)."""

    def circle_mlp_kernel(w1_ref, b1_ref, w2_ref, b2_ref, x_ref, o_ref):
        # w1:(2,20) b1:(20,) w2:(20,) b2:(1,) live in SMEM.
        # x:(2, tile_m, 128) and o:(tile_m, 128) live in VMEM (lane/sublane dense).
        tile_m = o_ref.shape[0]
        hidden = w1_ref.shape[1]          # 20, static
        n_chunks = tile_m // chunk        # static Python int

        @pl.loop(0, n_chunks)
        def _(c):
            r = pl.multiple_of(c * chunk, chunk)          # aligned sublane offset
            x0 = x_ref[0, pl.ds(r, chunk), :]             # (chunk, 128) feature 0
            x1 = x_ref[1, pl.ds(r, chunk), :]             # (chunk, 128) feature 1

            # layer_4 bias folded into the accumulator init.
            acc = jnp.full((chunk, LANE), b2_ref[0], dtype=jnp.float32)

            for j in range(hidden):                       # unrolled VPU broadcast-FMAs
                # layer_1: Linear(2, 20), one hidden unit at a time
                h = w1_ref[0, j] * x0 + w1_ref[1, j] * x1 + b1_ref[j]
                # layer_2: ReLU
                h = jnp.maximum(h, 0.0)
                # layer_3: ELU — exact identity on ReLU output (h >= 0, ELU(0)=0): folded.
                # layer_4: Linear(20, 1) accumulation
                acc = acc + w2_ref[j] * h

            o_ref[pl.ds(r, chunk), :] = acc               # unmasked full-lane stores

    return circle_mlp_kernel


def circle_module_forward(x, w1, b1, w2, b2, *, tile_m=1024):
    """x: (N, 2) f32 -> (N, 1) f32. Same math as Circle_Module.forward.

    Weights are stored transposed w.r.t. PyTorch: w1=(in,out)=(2,20), b1=(20,),
    w2=(20,) (= layer_4.weight[0]), b2=(1,).
    """
    N = x.shape[0]
    w1 = jnp.asarray(w1, jnp.float32).reshape(2, -1)
    b1 = jnp.asarray(b1, jnp.float32).reshape(-1)
    w2 = jnp.asarray(w2, jnp.float32).reshape(-1)
    b2 = jnp.asarray(b2, jnp.float32).reshape(-1)

    # Lane-dense slab geometry: batch -> (M, 128), M a multiple of tile_m (>= 8).
    m_min = pl.cdiv(max(N, 1), LANE)
    # Big tiles to amortise per-step overhead, capped at 2048 rows (~6 MiB double-buffered),
    # but never more than ~half the rows so >=2 grid steps exist for v7x's two TensorCores.
    tile_m = max(8, (min(tile_m, 2048) // 8) * 8)
    tile_cap = max(8, pl.cdiv(pl.cdiv(m_min, 2), 8) * 8)
    tile_m = min(tile_m, tile_cap)
    m_total = pl.cdiv(m_min, tile_m) * tile_m
    n_pad = m_total * LANE

    # Register-resident inner chunk: 32 rows (4 vregs/value) when possible, else 8 (1 vreg).
    chunk = 32 if tile_m % 32 == 0 else 8

    # Feature-major, zero-padded, reshaped to (2, M, 128). One fused transpose+pad pass.
    x_t = jnp.transpose(x.astype(jnp.float32))                 # (2, N)
    x_t = jnp.pad(x_t, ((0, 0), (0, n_pad - N)))               # (2, n_pad)
    x_t = x_t.reshape(2, m_total, LANE)                        # (2, M, 128)

    grid = (m_total // tile_m,)
    smem = pl.BlockSpec(memory_space=pltpu.MemorySpace.SMEM)   # tiny weight arrays in SMEM

    out = pl.pallas_call(
        make_circle_kernel(chunk),
        out_shape=jax.ShapeDtypeStruct((m_total, LANE), jnp.float32),
        grid=grid,
        in_specs=[
            smem,                                              # w1 (2, 20)
            smem,                                              # b1 (20,)
            smem,                                              # w2 (20,)
            smem,                                              # b2 (1,)
            pl.BlockSpec((2, tile_m, LANE), lambda i: (0, i, 0)),
        ],
        out_specs=pl.BlockSpec((tile_m, LANE), lambda i: (i, 0)),
        compiler_params=pltpu.CompilerParams(
            dimension_semantics=("parallel",),                 # shard batch across v7x TCs
        ),
    )(w1, b1, w2, b2, x_t)

    return out.reshape(n_pad)[:N].reshape(N, 1)


def init_params(key):
    """Deterministic init mirroring nn.Linear default U(-1/sqrt(fan_in), 1/sqrt(fan_in))."""
    k1, k2, k3, k4 = jax.random.split(key, 4)
    bound1 = 1.0 / jnp.sqrt(2.0)
    bound2 = 1.0 / jnp.sqrt(20.0)
    w1 = jax.random.uniform(k1, (2, 20), jnp.float32, -bound1, bound1)   # layer_1.weight.T
    b1 = jax.random.uniform(k2, (20,), jnp.float32, -bound1, bound1)     # layer_1.bias
    w2 = jax.random.uniform(k3, (20,), jnp.float32, -bound2, bound2)     # layer_4.weight[0]
    b2 = jax.random.uniform(k4, (1,), jnp.float32, -bound2, bound2)      # layer_4.bias
    return w1, b1, w2, b2


def _reference(x, w1, b1, w2, b2):
    """Pure-JAX replica of the exact PyTorch forward (ELU kept on purpose)."""
    h = x @ w1 + b1[None, :]
    h = jnp.maximum(h, 0.0)
    h = jnp.where(h > 0.0, h, jnp.exp(h) - 1.0)    # ELU (identity after ReLU)
    return h @ w2[:, None] + b2[None, :]


if __name__ == "__main__":
    key = jax.random.PRNGKey(0)
    kx1, kx2, kp = jax.random.split(key, 3)
    w1, b1, w2, b2 = init_params(kp)

    fwd = jax.jit(lambda xx: circle_module_forward(xx, w1, b1, w2, b2))

    # Case 1: small batch, not a multiple of 128 -> exercises padding + single-tile path.
    # (At sizes this small plain XLA would beat any kernel; the Pallas path targets large,
    #  HBM-streaming batches.)
    n_small = 300
    x_small = jax.random.normal(kx1, (n_small, 2), dtype=jnp.float32)
    out_small = jax.block_until_ready(fwd(x_small))
    ref_small = _reference(x_small, w1, b1, w2, b2)
    assert out_small.shape == (n_small, 2 // 2), out_small.shape
    assert jnp.allclose(out_small, ref_small, atol=1e-5, rtol=1e-5)

    # Case 2: modest batch that still drives a 2-step grid and a multi-chunk inner loop.
    n_big = 2560
    x_big = jax.random.normal(kx2, (n_big, 2), dtype=jnp.float32)
    out_big = jax.block_until_ready(fwd(x_big))
    ref_big = _reference(x_big, w1, b1, w2, b2)
    assert out_big.shape == (n_big, 1), out_big.shape
    assert jnp.allclose(out_big, ref_big, atol=1e-5, rtol=1e-5)

    print("KERNEL_OK")
</pallas_src>

<mosaic_0001>
module attributes {stable_mosaic.version = 11 : i64} {
  func.func @circle_mlp_kernel(%arg0: i32, %arg1: memref<2x20xf32, #tpu.memory_space<smem>>, %arg2: memref<20xf32, #tpu.memory_space<smem>>, %arg3: memref<20xf32, #tpu.memory_space<smem>>, %arg4: memref<1xf32, #tpu.memory_space<smem>>, %arg5: memref<2x8x128xf32, #tpu.memory_space<vmem>>, %arg6: memref<8x128xf32, #tpu.memory_space<vmem>>) attributes {dimension_semantics = [#tpu.dimension_semantics<parallel>], iteration_bounds = array<i64: 1>, scalar_prefetch = 0 : i64, scratch_operands = 0 : i64, tpu.core_type = #tpu.core_type<tc>, window_params = [{transform_indices = @transform_0, window_bounds = array<i64: 2, 20>}, {transform_indices = @transform_1, window_bounds = array<i64: 20>}, {transform_indices = @transform_2, window_bounds = array<i64: 20>}, {transform_indices = @transform_3, window_bounds = array<i64: 1>}, {transform_indices = @transform_4, window_bounds = array<i64: 2, 8, 128>}, {transform_indices = @transform_5, window_bounds = array<i64: 8, 128>}]} {
    %c0_i32 = arith.constant 0 : i32
    %c1_i32 = arith.constant 1 : i32
    %0 = arith.muli %c0_i32, %c1_i32 : i32
    %c0_i32_0 = arith.constant 0 : i32
    %1 = arith.addi %c0_i32_0, %0 : i32
    %c8_i32 = arith.constant 8 : i32
    %2 = arith.muli %1, %c8_i32 : i32
    %3 = tpu.assume_multiple %2, 8 : i32
    %c0 = arith.constant 0 : index
    %4 = arith.index_cast %3 : i32 to index
    %c0_1 = arith.constant 0 : index
    %5 = vector.load %arg5[%c0, %4, %c0_1] : memref<2x8x128xf32, #tpu.memory_space<vmem>>, vector<1x8x128xf32>
    %6 = vector.shape_cast %5 : vector<1x8x128xf32> to vector<8x128xf32>
    %c1 = arith.constant 1 : index
    %7 = arith.index_cast %3 : i32 to index
    %c0_2 = arith.constant 0 : index
    %8 = vector.load %arg5[%c1, %7, %c0_2] : memref<2x8x128xf32, #tpu.memory_space<vmem>>, vector<1x8x128xf32>
    %9 = vector.shape_cast %8 : vector<1x8x128xf32> to vector<8x128xf32>
    %c0_3 = arith.constant 0 : index
    %10 = memref.load %arg4[%c0_3] : memref<1xf32, #tpu.memory_space<smem>>
    %11 = vector.broadcast %10 : f32 to vector<8x128xf32>
    %c0_4 = arith.constant 0 : index
    %c0_5 = arith.constant 0 : index
    %12 = memref.load %arg1[%c0_4, %c0_5] : memref<2x20xf32, #tpu.memory_space<smem>>
    %13 = vector.broadcast %12 : f32 to vector<8x128xf32>
    %14 = arith.mulf %13, %6 : vector<8x128xf32>
    %c1_6 = arith.constant 1 : index
    %c0_7 = arith.constant 0 : index
    %15 = memref.load %arg1[%c1_6, %c0_7] : memref<2x20xf32, #tpu.memory_space<smem>>
    %16 = vector.broadcast %15 : f32 to vector<8x128xf32>
    %17 = arith.mulf %16, %9 : vector<8x128xf32>
    %18 = arith.addf %14, %17 : vector<8x128xf32>
    %c0_8 = arith.constant 0 : index
    %19 = memref.load %arg2[%c0_8] : memref<20xf32, #tpu.memory_space<smem>>
    %20 = vector.broadcast %19 : f32 to vector<8x128xf32>
    %21 = arith.addf %18, %20 : vector<8x128xf32>
    %cst = arith.constant 0.000000e+00 : f32
    %22 = vector.broadcast %cst : f32 to vector<8x128xf32>
    %23 = arith.maximumf %21, %22 : vector<8x128xf32>
    %c0_9 = arith.constant 0 : index
    %24 = memref.load %arg3[%c0_9] : memref<20xf32, #tpu.memory_space<smem>>
    %25 = vector.broadcast %24 : f32 to vector<8x128xf32>
    %26 = arith.mulf %25, %23 : vector<8x128xf32>
    %27 = arith.addf %11, %26 : vector<8x128xf32>
    %c0_10 = arith.constant 0 : index
    %c1_11 = arith.constant 1 : index
    %28 = memref.load %arg1[%c0_10, %c1_11] : memref<2x20xf32, #tpu.memory_space<smem>>
    %29 = vector.broadcast %28 : f32 to vector<8x128xf32>
    %30 = arith.mulf %29, %6 : vector<8x128xf32>
    %c1_12 = arith.constant 1 : index
    %c1_13 = arith.constant 1 : index
    %31 = memref.load %arg1[%c1_12, %c1_13] : memref<2x20xf32, #tpu.memory_space<smem>>
    %32 = vector.broadcast %31 : f32 to vector<8x128xf32>
    %33 = arith.mulf %32, %9 : vector<8x128xf32>
    %34 = arith.addf %30, %33 : vector<8x128xf32>
    %c1_14 = arith.constant 1 : index
    %35 = memref.load %arg2[%c1_14] : memref<20xf32, #tpu.memory_space<smem>>
    %36 = vector.broadcast %35 : f32 to vector<8x128xf32>
    %37 = arith.addf %34, %36 : vector<8x128xf32>
    %cst_15 = arith.constant 0.000000e+00 : f32
    %38 = vector.broadcast %cst_15 : f32 to vector<8x128xf32>
    %39 = arith.maximumf %37, %38 : vector<8x128xf32>
    %c1_16 = arith.constant 1 : index
    %40 = memref.load %arg3[%c1_16] : memref<20xf32, #tpu.memory_space<smem>>
    %41 = vector.broadcast %40 : f32 to vector<8x128xf32>
    %42 = arith.mulf %41, %39 : vector<8x128xf32>
    %43 = arith.addf %27, %42 : vector<8x128xf32>
    %c0_17 = arith.constant 0 : index
    %c2 = arith.constant 2 : index
    %44 = memref.load %arg1[%c0_17, %c2] : memref<2x20xf32, #tpu.memory_space<smem>>
    %45 = vector.broadcast %44 : f32 to vector<8x128xf32>
    %46 = arith.mulf %45, %6 : vector<8x128xf32>
    %c1_18 = arith.constant 1 : index
    %c2_19 = arith.constant 2 : index
    %47 = memref.load %arg1[%c1_18, %c2_19] : memref<2x20xf32, #tpu.memory_space<smem>>
    %48 = vector.broadcast %47 : f32 to vector<8x128xf32>
    %49 = arith.mulf %48, %9 : vector<8x128xf32>
    %50 = arith.addf %46, %49 : vector<8x128xf32>
    %c2_20 = arith.constant 2 : index
    %51 = memref.load %arg2[%c2_20] : memref<20xf32, #tpu.memory_space<smem>>
    %52 = vector.broadcast %51 : f32 to vector<8x128xf32>
    %53 = arith.addf %50, %52 : vector<8x128xf32>
    %cst_21 = arith.constant 0.000000e+00 : f32
    %54 = vector.broadcast %cst_21 : f32 to vector<8x128xf32>
    %55 = arith.maximumf %53, %54 : vector<8x128xf32>
    %c2_22 = arith.constant 2 : index
    %56 = memref.load %arg3[%c2_22] : memref<20xf32, #tpu.memory_space<smem>>
    %57 = vector.broadcast %56 : f32 to vector<8x128xf32>
    %58 = arith.mulf %57, %55 : vector<8x128xf32>
    %59 = arith.addf %43, %58 : vector<8x128xf32>
    %c0_23 = arith.constant 0 : index
    %c3 = arith.constant 3 : index
    %60 = memref.load %arg1[%c0_23, %c3] : memref<2x20xf32, #tpu.memory_space<smem>>
    %61 = vector.broadcast %60 : f32 to vector<8x128xf32>
    %62 = arith.mulf %61, %6 : vector<8x128xf32>
    %c1_24 = arith.constant 1 : index
    %c3_25 = arith.constant 3 : index
    %63 = memref.load %arg1[%c1_24, %c3_25] : memref<2x20xf32, #tpu.memory_space<smem>>
    %64 = vector.broadcast %63 : f32 to vector<8x128xf32>
    %65 = arith.mulf %64, %9 : vector<8x128xf32>
    %66 = arith.addf %62, %65 : vector<8x128xf32>
    %c3_26 = arith.constant 3 : index
    %67 = memref.load %arg2[%c3_26] : memref<20xf32, #tpu.memory_space<smem>>
    %68 = vector.broadcast %67 : f32 to vector<8x128xf32>
    %69 = arith.addf %66, %68 : vector<8x128xf32>
    %cst_27 = arith.constant 0.000000e+00 : f32
    %70 = vector.broadcast %cst_27 : f32 to vector<8x128xf32>
    %71 = arith.maximumf %69, %70 : vector<8x128xf32>
    %c3_28 = arith.constant 3 : index
    %72 = memref.load %arg3[%c3_28] : memref<20xf32, #tpu.memory_space<smem>>
    %73 = vector.broadcast %72 : f32 to vector<8x128xf32>
    %74 = arith.mulf %73, %71 : vector<8x128xf32>
    %75 = arith.addf %59, %74 : vector<8x128xf32>
    %c0_29 = arith.constant 0 : index
    %c4 = arith.constant 4 : index
    %76 = memref.load %arg1[%c0_29, %c4] : memref<2x20xf32, #tpu.memory_space<smem>>
    %77 = vector.broadcast %76 : f32 to vector<8x128xf32>
    %78 = arith.mulf %77, %6 : vector<8x128xf32>
    %c1_30 = arith.constant 1 : index
    %c4_31 = arith.constant 4 : index
    %79 = memref.load %arg1[%c1_30, %c4_31] : memref<2x20xf32, #tpu.memory_space<smem>>
    %80 = vector.broadcast %79 : f32 to vector<8x128xf32>
    %81 = arith.mulf %80, %9 : vector<8x128xf32>
    %82 = arith.addf %78, %81 : vector<8x128xf32>
    %c4_32 = arith.constant 4 : index
    %83 = memref.load %arg2[%c4_32] : memref<20xf32, #tpu.memory_space<smem>>
    %84 = vector.broadcast %83 : f32 to vector<8x128xf32>
    %85 = arith.addf %82, %84 : vector<8x128xf32>
    %cst_33 = arith.constant 0.000000e+00 : f32
    %86 = vector.broadcast %cst_33 : f32 to vector<8x128xf32>
    %87 = arith.maximumf %85, %86 : vector<8x128xf32>
    %c4_34 = arith.constant 4 : index
    %88 = memref.load %arg3[%c4_34] : memref<20xf32, #tpu.memory_space<smem>>
    %89 = vector.broadcast %88 : f32 to vector<8x128xf32>
    %90 = arith.mulf %89, %87 : vector<8x128xf32>
    %91 = arith.addf %75, %90 : vector<8x128xf32>
    %c0_35 = arith.constant 0 : index
    %c5 = arith.constant 5 : index
    %92 = memref.load %arg1[%c0_35, %c5] : memref<2x20xf32, #tpu.memory_space<smem>>
    %93 = vector.broadcast %92 : f32 to vector<8x128xf32>
    %94 = arith.mulf %93, %6 : vector<8x128xf32>
    %c1_36 = arith.constant 1 : index
    %c5_37 = arith.constant 5 : index
    %95 = memref.load %arg1[%c1_36, %c5_37] : memref<2x20xf32, #tpu.memory_space<smem>>
    %96 = vector.broadcast %95 : f32 to vector<8x128xf32>
    %97 = arith.mulf %96, %9 : vector<8x128xf32>
    %98 = arith.addf %94, %97 : vector<8x128xf32>
    %c5_38 = arith.constant 5 : index
    %99 = memref.load %arg2[%c5_38] : memref<20xf32, #tpu.memory_space<smem>>
    %100 = vector.broadcast %99 : f32 to vector<8x128xf32>
    %101 = arith.addf %98, %100 : vector<8x128xf32>
    %cst_39 = arith.constant 0.000000e+00 : f32
    %102 = vector.broadcast %cst_39 : f32 to vector<8x128xf32>
    %103 = arith.maximumf %101, %102 : vector<8x128xf32>
    %c5_40 = arith.constant 5 : index
    %104 = memref.load %arg3[%c5_40] : memref<20xf32, #tpu.memory_space<smem>>
    %105 = vector.broadcast %104 : f32 to vector<8x128xf32>
    %106 = arith.mulf %105, %103 : vector<8x128xf32>
    %107 = arith.addf %91, %106 : vector<8x128xf32>
    %c0_41 = arith.constant 0 : index
    %c6 = arith.constant 6 : index
    %108 = memref.load %arg1[%c0_41, %c6] : memref<2x20xf32, #tpu.memory_space<smem>>
    %109 = vector.broadcast %108 : f32 to vector<8x128xf32>
    %110 = arith.mulf %109, %6 : vector<8x128xf32>
    %c1_42 = arith.constant 1 : index
    %c6_43 = arith.constant 6 : index
    %111 = memref.load %arg1[%c1_42, %c6_43] : memref<2x20xf32, #tpu.memory_space<smem>>
    %112 = vector.broadcast %111 : f32 to vector<8x128xf32>
    %113 = arith.mulf %112, %9 : vector<8x128xf32>
    %114 = arith.addf %110, %113 : vector<8x128xf32>
    %c6_44 = arith.constant 6 : index
    %115 = memref.load %arg2[%c6_44] : memref<20xf32, #tpu.memory_space<smem>>
    %116 = vector.broadcast %115 : f32 to vector<8x128xf32>
    %117 = arith.addf %114, %116 : vector<8x128xf32>
    %cst_45 = arith.constant 0.000000e+00 : f32
    %118 = vector.broadcast %cst_45 : f32 to vector<8x128xf32>
    %119 = arith.maximumf %117, %118 : vector<8x128xf32>
    %c6_46 = arith.constant 6 : index
    %120 = memref.load %arg3[%c6_46] : memref<20xf32, #tpu.memory_space<smem>>
    %121 = vector.broadcast %120 : f32 to vector<8x128xf32>
    %122 = arith.mulf %121, %119 : vector<8x128xf32>
    %123 = arith.addf %107, %122 : vector<8x128xf32>
    %c0_47 = arith.constant 0 : index
    %c7 = arith.constant 7 : index
    %124 = memref.load %arg1[%c0_47, %c7] : memref<2x20xf32, #tpu.memory_space<smem>>
    %125 = vector.broadcast %124 : f32 to vector<8x128xf32>
    %126 = arith.mulf %125, %6 : vector<8x128xf32>
    %c1_48 = arith.constant 1 : index
    %c7_49 = arith.constant 7 : index
    %127 = memref.load %arg1[%c1_48, %c7_49] : memref<2x20xf32, #tpu.memory_space<smem>>
    %128 = vector.broadcast %127 : f32 to vector<8x128xf32>
    %129 = arith.mulf %128, %9 : vector<8x128xf32>
    %130 = arith.addf %126, %129 : vector<8x128xf32>
    %c7_50 = arith.constant 7 : index
    %131 = memref.load %arg2[%c7_50] : memref<20xf32, #tpu.memory_space<smem>>
    %132 = vector.broadcast %131 : f32 to vector<8x128xf32>
    %133 = arith.addf %130, %132 : vector<8x128xf32>
    %cst_51 = arith.constant 0.000000e+00 : f32
    %134 = vector.broadcast %cst_51 : f32 to vector<8x128xf32>
    %135 = arith.maximumf %133, %134 : vector<8x128xf32>
    %c7_52 = arith.constant 7 : index
    %136 = memref.load %arg3[%c7_52] : memref<20xf32, #tpu.memory_space<smem>>
    %137 = vector.broadcast %136 : f32 to vector<8x128xf32>
    %138 = arith.mulf %137, %135 : vector<8x128xf32>
    %139 = arith.addf %123, %138 : vector<8x128xf32>
    %c0_53 = arith.constant 0 : index
    %c8 = arith.constant 8 : index
    %140 = memref.load %arg1[%c0_53, %c8] : memref<2x20xf32, #tpu.memory_space<smem>>
    %141 = vector.broadcast %140 : f32 to vector<8x128xf32>
    %142 = arith.mulf %141, %6 : vector<8x128xf32>
    %c1_54 = arith.constant 1 : index
    %c8_55 = arith.constant 8 : index
    %143 = memref.load %arg1[%c1_54, %c8_55] : memref<2x20xf32, #tpu.memory_space<smem>>
    %144 = vector.broadcast %143 : f32 to vector<8x128xf32>
    %145 = arith.mulf %144, %9 : vector<8x128xf32>
    %146 = arith.addf %142, %145 : vector<8x128xf32>
    %c8_56 = arith.constant 8 : index
    %147 = memref.load %arg2[%c8_56] : memref<20xf32, #tpu.memory_space<smem>>
    %148 = vector.broadcast %147 : f32 to vector<8x128xf32>
    %149 = arith.addf %146, %148 : vector<8x128xf32>
    %cst_57 = arith.constant 0.000000e+00 : f32
    %150 = vector.broadcast %cst_57 : f32 to vector<8x128xf32>
    %151 = arith.maximumf %149, %150 : vector<8x128xf32>
    %c8_58 = arith.constant 8 : index
    %152 = memref.load %arg3[%c8_58] : memref<20xf32, #tpu.memory_space<smem>>
    %153 = vector.broadcast %152 : f32 to vector<8x128xf32>
    %154 = arith.mulf %153, %151 : vector<8x128xf32>
    %155 = arith.addf %139, %154 : vector<8x128xf32>
    %c0_59 = arith.constant 0 : index
    %c9 = arith.constant 9 : index
    %156 = memref.load %arg1[%c0_59, %c9] : memref<2x20xf32, #tpu.memory_space<smem>>
    %157 = vector.broadcast %156 : f32 to vector<8x128xf32>
    %158 = arith.mulf %157, %6 : vector<8x128xf32>
    %c1_60 = arith.constant 1 : index
    %c9_61 = arith.constant 9 : index
    %159 = memref.load %arg1[%c1_60, %c9_61] : memref<2x20xf32, #tpu.memory_space<smem>>
    %160 = vector.broadcast %159 : f32 to vector<8x128xf32>
    %161 = arith.mulf %160, %9 : vector<8x128xf32>
    %162 = arith.addf %158, %161 : vector<8x128xf32>
    %c9_62 = arith.constant 9 : index
    %163 = memref.load %arg2[%c9_62] : memref<20xf32, #tpu.memory_space<smem>>
    %164 = vector.broadcast %163 : f32 to vector<8x128xf32>
    %165 = arith.addf %162, %164 : vector<8x128xf32>
    %cst_63 = arith.constant 0.000000e+00 : f32
    %166 = vector.broadcast %cst_63 : f32 to vector<8x128xf32>
    %167 = arith.maximumf %165, %166 : vector<8x128xf32>
    %c9_64 = arith.constant 9 : index
    %168 = memref.load %arg3[%c9_64] : memref<20xf32, #tpu.memory_space<smem>>
    %169 = vector.broadcast %168 : f32 to vector<8x128xf32>
    %170 = arith.mulf %169, %167 : vector<8x128xf32>
    %171 = arith.addf %155, %170 : vector<8x128xf32>
    %c0_65 = arith.constant 0 : index
    %c10 = arith.constant 10 : index
    %172 = memref.load %arg1[%c0_65, %c10] : memref<2x20xf32, #tpu.memory_space<smem>>
    %173 = vector.broadcast %172 : f32 to vector<8x128xf32>
    %174 = arith.mulf %173, %6 : vector<8x128xf32>
    %c1_66 = arith.constant 1 : index
    %c10_67 = arith.constant 10 : index
    %175 = memref.load %arg1[%c1_66, %c10_67] : memref<2x20xf32, #tpu.memory_space<smem>>
    %176 = vector.broadcast %175 : f32 to vector<8x128xf32>
    %177 = arith.mulf %176, %9 : vector<8x128xf32>
    %178 = arith.addf %174, %177 : vector<8x128xf32>
    %c10_68 = arith.constant 10 : index
    %179 = memref.load %arg2[%c10_68] : memref<20xf32, #tpu.memory_space<smem>>
    %180 = vector.broadcast %179 : f32 to vector<8x128xf32>
    %181 = arith.addf %178, %180 : vector<8x128xf32>
    %cst_69 = arith.constant 0.000000e+00 : f32
    %182 = vector.broadcast %cst_69 : f32 to vector<8x128xf32>
    %183 = arith.maximumf %181, %182 : vector<8x128xf32>
    %c10_70 = arith.constant 10 : index
    %184 = memref.load %arg3[%c10_70] : memref<20xf32, #tpu.memory_space<smem>>
    %185 = vector.broadcast %184 : f32 to vector<8x128xf32>
    %186 = arith.mulf %185, %183 : vector<8x128xf32>
    %187 = arith.addf %171, %186 : vector<8x128xf32>
    %c0_71 = arith.constant 0 : index
    %c11 = arith.constant 11 : index
    %188 = memref.load %arg1[%c0_71, %c11] : memref<2x20xf32, #tpu.memory_space<smem>>
    %189 = vector.broadcast %188 : f32 to vector<8x128xf32>
    %190 = arith.mulf %189, %6 : vector<8x128xf32>
    %c1_72 = arith.constant 1 : index
    %c11_73 = arith.constant 11 : index
    %191 = memref.load %arg1[%c1_72, %c11_73] : memref<2x20xf32, #tpu.memory_space<smem>>
    %192 = vector.broadcast %191 : f32 to vector<8x128xf32>
    %193 = arith.mulf %192, %9 : vector<8x128xf32>
    %194 = arith.addf %190, %193 : vector<8x128xf32>
    %c11_74 = arith.constant 11 : index
    %195 = memref.load %arg2[%c11_74] : memref<20xf32, #tpu.memory_space<smem>>
    %196 = vector.broadcast %195 : f32 to vector<8x128xf32>
    %197 = arith.addf %194, %196 : vector<8x128xf32>
    %cst_75 = arith.constant 0.000000e+00 : f32
    %198 = vector.broadcast %cst_75 : f32 to vector<8x128xf32>
    %199 = arith.maximumf %197, %198 : vector<8x128xf32>
    %c11_76 = arith.constant 11 : index
    %200 = memref.load %arg3[%c11_76] : memref<20xf32, #tpu.memory_space<smem>>
    %201 = vector.broadcast %200 : f32 to vector<8x128xf32>
    %202 = arith.mulf %201, %199 : vector<8x128xf32>
    %203 = arith.addf %187, %202 : vector<8x128xf32>
    %c0_77 = arith.constant 0 : index
    %c12 = arith.constant 12 : index
    %204 = memref.load %arg1[%c0_77, %c12] : memref<2x20xf32, #tpu.memory_space<smem>>
    %205 = vector.broadcast %204 : f32 to vector<8x128xf32>
    %206 = arith.mulf %205, %6 : vector<8x128xf32>
    %c1_78 = arith.constant 1 : index
    %c12_79 = arith.constant 12 : index
    %207 = memref.load %arg1[%c1_78, %c12_79] : memref<2x20xf32, #tpu.memory_space<smem>>
    %208 = vector.broadcast %207 : f32 to vector<8x128xf32>
    %209 = arith.mulf %208, %9 : vector<8x128xf32>
    %210 = arith.addf %206, %209 : vector<8x128xf32>
    %c12_80 = arith.constant 12 : index
    %211 = memref.load %arg2[%c12_80] : memref<20xf32, #tpu.memory_space<smem>>
    %212 = vector.broadcast %211 : f32 to vector<8x128xf32>
    %213 = arith.addf %210, %212 : vector<8x128xf32>
    %cst_81 = arith.constant 0.000000e+00 : f32
    %214 = vector.broadcast %cst_81 : f32 to vector<8x128xf32>
    %215 = arith.maximumf %213, %214 : vector<8x128xf32>
    %c12_82 = arith.constant 12 : index
    %216 = memref.load %arg3[%c12_82] : memref<20xf32, #tpu.memory_space<smem>>
    %217 = vector.broadcast %216 : f32 to vector<8x128xf32>
    %218 = arith.mulf %217, %215 : vector<8x128xf32>
    %219 = arith.addf %203, %218 : vector<8x128xf32>
    %c0_83 = arith.constant 0 : index
    %c13 = arith.constant 13 : index
    %220 = memref.load %arg1[%c0_83, %c13] : memref<2x20xf32, #tpu.memory_space<smem>>
    %221 = vector.broadcast %220 : f32 to vector<8x128xf32>
    %222 = arith.mulf %221, %6 : vector<8x128xf32>
    %c1_84 = arith.constant 1 : index
    %c13_85 = arith.constant 13 : index
    %223 = memref.load %arg1[%c1_84, %c13_85] : memref<2x20xf32, #tpu.memory_space<smem>>
    %224 = vector.broadcast %223 : f32 to vector<8x128xf32>
    %225 = arith.mulf %224, %9 : vector<8x128xf32>
    %226 = arith.addf %222, %225 : vector<8x128xf32>
    %c13_86 = arith.constant 13 : index
    %227 = memref.load %arg2[%c13_86] : memref<20xf32, #tpu.memory_space<smem>>
    %228 = vector.broadcast %227 : f32 to vector<8x128xf32>
    %229 = arith.addf %226, %228 : vector<8x128xf32>
    %cst_87 = arith.constant 0.000000e+00 : f32
    %230 = vector.broadcast %cst_87 : f32 to vector<8x128xf32>
    %231 = arith.maximumf %229, %230 : vector<8x128xf32>
    %c13_88 = arith.constant 13 : index
    %232 = memref.load %arg3[%c13_88] : memref<20xf32, #tpu.memory_space<smem>>
    %233 = vector.broadcast %232 : f32 to vector<8x128xf32>
    %234 = arith.mulf %233, %231 : vector<8x128xf32>
    %235 = arith.addf %219, %234 : vector<8x128xf32>
    %c0_89 = arith.constant 0 : index
    %c14 = arith.constant 14 : index
    %236 = memref.load %arg1[%c0_89, %c14] : memref<2x20xf32, #tpu.memory_space<smem>>
    %237 = vector.broadcast %236 : f32 to vector<8x128xf32>
    %238 = arith.mulf %237, %6 : vector<8x128xf32>
    %c1_90 = arith.constant 1 : index
    %c14_91 = arith.constant 14 : index
    %239 = memref.load %arg1[%c1_90, %c14_91] : memref<2x20xf32, #tpu.memory_space<smem>>
    %240 = vector.broadcast %239 : f32 to vector<8x128xf32>
    %241 = arith.mulf %240, %9 : vector<8x128xf32>
    %242 = arith.addf %238, %241 : vector<8x128xf32>
    %c14_92 = arith.constant 14 : index
    %243 = memref.load %arg2[%c14_92] : memref<20xf32, #tpu.memory_space<smem>>
    %244 = vector.broadcast %243 : f32 to vector<8x128xf32>
    %245 = arith.addf %242, %244 : vector<8x128xf32>
    %cst_93 = arith.constant 0.000000e+00 : f32
    %246 = vector.broadcast %cst_93 : f32 to vector<8x128xf32>
    %247 = arith.maximumf %245, %246 : vector<8x128xf32>
    %c14_94 = arith.constant 14 : index
    %248 = memref.load %arg3[%c14_94] : memref<20xf32, #tpu.memory_space<smem>>
    %249 = vector.broadcast %248 : f32 to vector<8x128xf32>
    %250 = arith.mulf %249, %247 : vector<8x128xf32>
    %251 = arith.addf %235, %250 : vector<8x128xf32>
    %c0_95 = arith.constant 0 : index
    %c15 = arith.constant 15 : index
    %252 = memref.load %arg1[%c0_95, %c15] : memref<2x20xf32, #tpu.memory_space<smem>>
    %253 = vector.broadcast %252 : f32 to vector<8x128xf32>
    %254 = arith.mulf %253, %6 : vector<8x128xf32>
    %c1_96 = arith.constant 1 : index
    %c15_97 = arith.constant 15 : index
    %255 = memref.load %arg1[%c1_96, %c15_97] : memref<2x20xf32, #tpu.memory_space<smem>>
    %256 = vector.broadcast %255 : f32 to vector<8x128xf32>
    %257 = arith.mulf %256, %9 : vector<8x128xf32>
    %258 = arith.addf %254, %257 : vector<8x128xf32>
    %c15_98 = arith.constant 15 : index
    %259 = memref.load %arg2[%c15_98] : memref<20xf32, #tpu.memory_space<smem>>
    %260 = vector.broadcast %259 : f32 to vector<8x128xf32>
    %261 = arith.addf %258, %260 : vector<8x128xf32>
    %cst_99 = arith.constant 0.000000e+00 : f32
    %262 = vector.broadcast %cst_99 : f32 to vector<8x128xf32>
    %263 = arith.maximumf %261, %262 : vector<8x128xf32>
    %c15_100 = arith.constant 15 : index
    %264 = memref.load %arg3[%c15_100] : memref<20xf32, #tpu.memory_space<smem>>
    %265 = vector.broadcast %264 : f32 to vector<8x128xf32>
    %266 = arith.mulf %265, %263 : vector<8x128xf32>
    %267 = arith.addf %251, %266 : vector<8x128xf32>
    %c0_101 = arith.constant 0 : index
    %c16 = arith.constant 16 : index
    %268 = memref.load %arg1[%c0_101, %c16] : memref<2x20xf32, #tpu.memory_space<smem>>
    %269 = vector.broadcast %268 : f32 to vector<8x128xf32>
    %270 = arith.mulf %269, %6 : vector<8x128xf32>
    %c1_102 = arith.constant 1 : index
    %c16_103 = arith.constant 16 : index
    %271 = memref.load %arg1[%c1_102, %c16_103] : memref<2x20xf32, #tpu.memory_space<smem>>
    %272 = vector.broadcast %271 : f32 to vector<8x128xf32>
    %273 = arith.mulf %272, %9 : vector<8x128xf32>
    %274 = arith.addf %270, %273 : vector<8x128xf32>
    %c16_104 = arith.constant 16 : index
    %275 = memref.load %arg2[%c16_104] : memref<20xf32, #tpu.memory_space<smem>>
    %276 = vector.broadcast %275 : f32 to vector<8x128xf32>
    %277 = arith.addf %274, %276 : vector<8x128xf32>
    %cst_105 = arith.constant 0.000000e+00 : f32
    %278 = vector.broadcast %cst_105 : f32 to vector<8x128xf32>
    %279 = arith.maximumf %277, %278 : vector<8x128xf32>
    %c16_106 = arith.constant 16 : index
    %280 = memref.load %arg3[%c16_106] : memref<20xf32, #tpu.memory_space<smem>>
    %281 = vector.broadcast %280 : f32 to vector<8x128xf32>
    %282 = arith.mulf %281, %279 : vector<8x128xf32>
    %283 = arith.addf %267, %282 : vector<8x128xf32>
    %c0_107 = arith.constant 0 : index
    %c17 = arith.constant 17 : index
    %284 = memref.load %arg1[%c0_107, %c17] : memref<2x20xf32, #tpu.memory_space<smem>>
    %285 = vector.broadcast %284 : f32 to vector<8x128xf32>
    %286 = arith.mulf %285, %6 : vector<8x128xf32>
    %c1_108 = arith.constant 1 : index
    %c17_109 = arith.constant 17 : index
    %287 = memref.load %arg1[%c1_108, %c17_109] : memref<2x20xf32, #tpu.memory_space<smem>>
    %288 = vector.broadcast %287 : f32 to vector<8x128xf32>
    %289 = arith.mulf %288, %9 : vector<8x128xf32>
    %290 = arith.addf %286, %289 : vector<8x128xf32>
    %c17_110 = arith.constant 17 : index
    %291 = memref.load %arg2[%c17_110] : memref<20xf32, #tpu.memory_space<smem>>
    %292 = vector.broadcast %291 : f32 to vector<8x128xf32>
    %293 = arith.addf %290, %292 : vector<8x128xf32>
    %cst_111 = arith.constant 0.000000e+00 : f32
    %294 = vector.broadcast %cst_111 : f32 to vector<8x128xf32>
    %295 = arith.maximumf %293, %294 : vector<8x128xf32>
    %c17_112 = arith.constant 17 : index
    %296 = memref.load %arg3[%c17_112] : memref<20xf32, #tpu.memory_space<smem>>
    %297 = vector.broadcast %296 : f32 to vector<8x128xf32>
    %298 = arith.mulf %297, %295 : vector<8x128xf32>
    %299 = arith.addf %283, %298 : vector<8x128xf32>
    %c0_113 = arith.constant 0 : index
    %c18 = arith.constant 18 : index
    %300 = memref.load %arg1[%c0_113, %c18] : memref<2x20xf32, #tpu.memory_space<smem>>
    %301 = vector.broadcast %300 : f32 to vector<8x128xf32>
    %302 = arith.mulf %301, %6 : vector<8x128xf32>
    %c1_114 = arith.constant 1 : index
    %c18_115 = arith.constant 18 : index
    %303 = memref.load %arg1[%c1_114, %c18_115] : memref<2x20xf32, #tpu.memory_space<smem>>
    %304 = vector.broadcast %303 : f32 to vector<8x128xf32>
    %305 = arith.mulf %304, %9 : vector<8x128xf32>
    %306 = arith.addf %302, %305 : vector<8x128xf32>
    %c18_116 = arith.constant 18 : index
    %307 = memref.load %arg2[%c18_116] : memref<20xf32, #tpu.memory_space<smem>>
    %308 = vector.broadcast %307 : f32 to vector<8x128xf32>
    %309 = arith.addf %306, %308 : vector<8x128xf32>
    %cst_117 = arith.constant 0.000000e+00 : f32
    %310 = vector.broadcast %cst_117 : f32 to vector<8x128xf32>
    %311 = arith.maximumf %309, %310 : vector<8x128xf32>
    %c18_118 = arith.constant 18 : index
    %312 = memref.load %arg3[%c18_118] : memref<20xf32, #tpu.memory_space<smem>>
    %313 = vector.broadcast %312 : f32 to vector<8x128xf32>
    %314 = arith.mulf %313, %311 : vector<8x128xf32>
    %315 = arith.addf %299, %314 : vector<8x128xf32>
    %c0_119 = arith.constant 0 : index
    %c19 = arith.constant 19 : index
    %316 = memref.load %arg1[%c0_119, %c19] : memref<2x20xf32, #tpu.memory_space<smem>>
    %317 = vector.broadcast %316 : f32 to vector<8x128xf32>
    %318 = arith.mulf %317, %6 : vector<8x128xf32>
    %c1_120 = arith.constant 1 : index
    %c19_121 = arith.constant 19 : index
    %319 = memref.load %arg1[%c1_120, %c19_121] : memref<2x20xf32, #tpu.memory_space<smem>>
    %320 = vector.broadcast %319 : f32 to vector<8x128xf32>
    %321 = arith.mulf %320, %9 : vector<8x128xf32>
    %322 = arith.addf %318, %321 : vector<8x128xf32>
    %c19_122 = arith.constant 19 : index
    %323 = memref.load %arg2[%c19_122] : memref<20xf32, #tpu.memory_space<smem>>
    %324 = vector.broadcast %323 : f32 to vector<8x128xf32>
    %325 = arith.addf %322, %324 : vector<8x128xf32>
    %cst_123 = arith.constant 0.000000e+00 : f32
    %326 = vector.broadcast %cst_123 : f32 to vector<8x128xf32>
    %327 = arith.maximumf %325, %326 : vector<8x128xf32>
    %c19_124 = arith.constant 19 : index
    %328 = memref.load %arg3[%c19_124] : memref<20xf32, #tpu.memory_space<smem>>
    %329 = vector.broadcast %328 : f32 to vector<8x128xf32>
    %330 = arith.mulf %329, %327 : vector<8x128xf32>
    %331 = arith.addf %315, %330 : vector<8x128xf32>
    %332 = arith.index_cast %3 : i32 to index
    %c0_125 = arith.constant 0 : index
    %333 = vector.load %arg6[%332, %c0_125] : memref<8x128xf32, #tpu.memory_space<vmem>>, vector<8x128xf32>
    tpu.vector_store %arg6[%332, %c0_125], %331 {strides = array<i32>} : memref<8x128xf32, #tpu.memory_space<vmem>>, vector<8x128xf32>,
    %c1_i32_126 = arith.constant 1 : i32
    return
  }
  func.func @transform_0(%arg0: i32) -> (i32, i32) {
    %c0_i32 = arith.constant 0 : i32
    %c0_i32_0 = arith.constant 0 : i32
    %c0_i32_1 = arith.constant 0 : i32
    return %c0_i32, %c0_i32_0 : i32, i32
  }
  func.func @transform_1(%arg0: i32) -> i32 {
    %c0_i32 = arith.constant 0 : i32
    %c0_i32_0 = arith.constant 0 : i32
    return %c0_i32 : i32
  }
  func.func @transform_2(%arg0: i32) -> i32 {
    %c0_i32 = arith.constant 0 : i32
    %c0_i32_0 = arith.constant 0 : i32
    return %c0_i32 : i32
  }
  func.func @transform_3(%arg0: i32) -> i32 {
    %c0_i32 = arith.constant 0 : i32
    %c0_i32_0 = arith.constant 0 : i32
    return %c0_i32 : i32
  }
  func.func @transform_4(%arg0: i32) -> (i32, i32, i32) {
    %c0_i32 = arith.constant 0 : i32
    %c0_i32_0 = arith.constant 0 : i32
    %c0_i32_1 = arith.constant 0 : i32
    return %c0_i32, %arg0, %c0_i32_0 : i32, i32, i32
  }
  func.func @transform_5(%arg0: i32) -> (i32, i32) {
    %c0_i32 = arith.constant 0 : i32
    %c0_i32_0 = arith.constant 0 : i32
    return %arg0, %c0_i32 : i32, i32
  }
}

</mosaic_0001>

<bundles_post_ra>
// kernel: _lambda_.1
= control target key start
LH: loop header
LB: loop body
LE: loop exit
PB: predicated region body
PF: predicated region fallthrough
CT: control target
= control target key end

     0   :  { %11 = vsyncpa [#allocation4], 0  ;;  %s698_s0 = inlined_call_operand.vmem [shape: f32[2,20], index: 0, kind: input, shape index: {}]   ;;  %s699_s1 = inlined_call_operand.vmem [shape: f32[20], index: 1, kind: input, shape index: {}]   ;;  %s700_s2 = inlined_call_operand.vmem [shape: f32[20], index: 2, kind: input, shape index: {}]   ;;  %s701_s3 = inlined_call_operand.<no memory space> [shape: f32[1], index: 3, kind: input, shape index: {}]   ;;  %s702_s4 = inlined_call_operand.vmem [shape: f32[2,8,128], index: 4, kind: input, shape index: {}]   ;;  %s703_s5 = inlined_call_operand.vmem [shape: f32[8,128], index: 5, kind: output, shape index: {}]  }
   0x1   :  { %12 = vsyncpa [#allocation6], 0  ;;  %s27_s20 = sshll.u32 %s699_s1, 4  ;;  %s18_s23 = sshll.u32 %s698_s0, 4  ;;  %s28_s20 = int_to_ptr.vmem [resolvable:$true] %s27_s20  ;;  %s19_s23 = int_to_ptr.vmem [resolvable:$true] %s18_s23 }
   0x2   :  { %s492_s24 = smov [#allocation5]   ;;  %s493_s25 = smov [#allocation3]  }
   0x3   :  { %30 = dma.vmem_to_smem %s28_s20, 16, %s492_s24, [#allocation6]  }
   0x4   :  { %21 = dma.vmem_to_smem %s19_s23, 32, %s493_s25, [#allocation4]  }
   0x5   :  { %s36_s28 = sshll.u32 %s700_s2, 4  ;;  %s494_s29 = smov [#allocation7]   ;;  %s37_s28 = int_to_ptr.vmem [resolvable:$true] %s36_s28 }
   0x6   :  { %39 = dma.vmem_to_smem %s37_s28, 16, %s494_s29, [#allocation6]  }
   0x7   :  { %488 = dma.done.wait [#allocation4], 32  }
   0x8   :  { %489 = vsyncadd [#allocation4], 4294967264 }
   0x9   :  { %490 = dma.done.wait [#allocation6], 32  }
   0xa   :  { %491 = vsyncadd [#allocation6], 4294967264 }
   0xb   :  { %56 = sfence }
   0xc   :  { %s63_s1 = sld [smem:[#allocation3]]  ;;  %v539_v0 = vld [vmem:[%s702_s4] sm:$0xff]  ;;  %v544_v1 = vld [vmem:[%s702_s4 + $0x8] sm:$0xff]  ;;  %v62_v18 = vstv %s701_s3 }
   0xd   :  { %s372_s30 = sld [smem:[#allocation3 + $0x80]] }
   0xe   :  { %s70_s0 = sld [smem:[#allocation5]] }
   0xf   :  { %s534_s6 = sld [smem:[#allocation7]] }
  0x10   :  { %s373_s9 = sld [smem:[#allocation3 + $0x1]] }
  0x11   :  { %s374_s11 = sld [smem:[#allocation3 + $0x81]] }
  0x12   :  { %v64_v2 = vstv %s63_s1  ;;  %s375_s12 = sld [smem:[#allocation5 + $0x1]] }
  0x13   :  { %v65_v3 = vmul.f32 %v64_v2, %v539_v0  ;;  %v67_v4 = vstv %s372_s30  ;;  %s547_s13 = sld [smem:[#allocation7 + $0x1]] }
  0x14   :  { %v68_v5 = vmul.f32 %v544_v1, %v67_v4  ;;  %s377_s14 = sld [smem:[#allocation3 + $0x2]]  ;;  %v71_v6 = vstv %s70_s0 }
  0x15   :  { %s378_s15 = sld [smem:[#allocation3 + $0x82]]  ;;  %v75_v13 = vstv %s534_s6 }
  0x16   :  { %v69_v7 = vadd.f32 %v68_v5, %v65_v3  ;;  %v79_v8 = vstv %s373_s9  ;;  %s550_s16 = sld [smem:[#allocation5 + $0x2]] }
  0x17   :  { %v80_v9 = vmul.f32 %v79_v8, %v539_v0  ;;  %v82_v10 = vstv %s374_s11  ;;  %s553_s4 = sld [smem:[#allocation7 + $0x2]] }
  0x18   :  { %v72_v11 = vadd.f32 %v71_v6, %v69_v7  ;;  %v83_v12 = vmul.f32 %v544_v1, %v82_v10  ;;  %s381_s17 = sld [smem:[#allocation3 + $0x3]]  ;;  %v86_v14 = vstv %s375_s12 }
  0x19   :  { %s382_s18 = sld [smem:[#allocation3 + $0x83]]  ;;  %v90_v24 = vstv %s547_s13 }
  0x1a   :  { %v73_v15 = vmax.f32 %v72_v11, 0.0  ;;  %v84_v16 = vadd.f32 %v83_v12, %v80_v9  ;;  %v94_v17 = vstv %s377_s14  ;;  %s557_s19 = sld [smem:[#allocation5 + $0x3]] }
  0x1b   :  { %v95_v19 = vmul.f32 %v94_v17, %v539_v0  ;;  %v97_v20 = vstv %s378_s15  ;;  %s563_s22 = sld [smem:[#allocation7 + $0x3]] }
  0x1c   :  { %v76_v21 = vmul.f32 %v75_v13, %v73_v15  ;;  %v87_v22 = vadd.f32 %v86_v14, %v84_v16  ;;  %v98_v23 = vmul.f32 %v544_v1, %v97_v20  ;;  %s385_s23 = sld [smem:[#allocation3 + $0x4]]  ;;  %v101_v25 = vstv %s550_s16 }
  0x1d   :  { %s386_s24 = sld [smem:[#allocation3 + $0x84]]  ;;  %v105_v35 = vstv %s553_s4 }
  0x1e   :  { %v77_v26 = vadd.f32 %v76_v21, %v62_v18  ;;  %v88_v27 = vmax.f32 %v87_v22, 0.0  ;;  %v99_v28 = vadd.f32 %v98_v23, %v95_v19  ;;  %v109_v29 = vstv %s381_s17  ;;  %s568_s3 = sld [smem:[#allocation5 + $0x4]] }
  0x1f   :  { %v110_v30 = vmul.f32 %v109_v29, %v539_v0  ;;  %v112_v31 = vstv %s382_s18  ;;  %s571_s25 = sld [smem:[#allocation7 + $0x4]] }
  0x20   :  { %v91_v32 = vmul.f32 %v90_v24, %v88_v27  ;;  %v102_v33 = vadd.f32 %v101_v25, %v99_v28  ;;  %v113_v34 = vmul.f32 %v544_v1, %v112_v31  ;;  %s389_s26 = sld [smem:[#allocation3 + $0x5]]  ;;  %v116_v36 = vstv %s557_s19 }
  0x21   :  { %s390_s27 = sld [smem:[#allocation3 + $0x85]]  ;;  %v120_v46 = vstv %s563_s22 }
  0x22   :  { %v92_v37 = vadd.f32 %v91_v32, %v77_v26  ;;  %v103_v38 = vmax.f32 %v102_v33, 0.0  ;;  %v114_v39 = vadd.f32 %v113_v34, %v110_v30  ;;  %v124_v40 = vstv %s385_s23  ;;  %s576_s28 = sld [smem:[#allocation5 + $0x5]] }
  0x23   :  { %v125_v41 = vmul.f32 %v124_v40, %v539_v0  ;;  %v127_v42 = vstv %s386_s24  ;;  %s579_s29 = sld [smem:[#allocation7 + $0x5]] }
  0x24   :  { %v106_v43 = vmul.f32 %v105_v35, %v103_v38  ;;  %v117_v44 = vadd.f32 %v116_v36, %v114_v39  ;;  %v128_v45 = vmul.f32 %v544_v1, %v127_v42  ;;  %s393_s1 = sld [smem:[#allocation3 + $0x6]]  ;;  %v131_v47 = vstv %s568_s3 }
  0x25   :  { %s394_s30 = sld [smem:[#allocation3 + $0x86]]  ;;  %v135_v57 = vstv %s571_s25 }
  0x26   :  { %v107_v48 = vadd.f32 %v106_v43, %v92_v37  ;;  %v118_v49 = vmax.f32 %v117_v44, 0.0  ;;  %v129_v50 = vadd.f32 %v128_v45, %v125_v41  ;;  %v139_v51 = vstv %s389_s26  ;;  %s584_s0 = sld [smem:[#allocation5 + $0x6]] }
  0x27   :  { %v140_v52 = vmul.f32 %v139_v51, %v539_v0  ;;  %v142_v53 = vstv %s390_s27  ;;  %s587_s6 = sld [smem:[#allocation7 + $0x6]] }
  0x28   :  { %v121_v54 = vmul.f32 %v120_v46, %v118_v49  ;;  %v132_v55 = vadd.f32 %v131_v47, %v129_v50  ;;  %v143_v56 = vmul.f32 %v544_v1, %v142_v53  ;;  %s397_s7 = sld [smem:[#allocation3 + $0x7]]  ;;  %v146_v58 = vstv %s576_s28 }
  0x29   :  { %s398_s8 = sld [smem:[#allocation3 + $0x87]]  ;;  %v150_v6 = vstv %s579_s29 }
  0x2a   :  { %v122_v59 = vadd.f32 %v121_v54, %v107_v48  ;;  %v133_v60 = vmax.f32 %v132_v55, 0.0  ;;  %v144_v61 = vadd.f32 %v143_v56, %v140_v52  ;;  %v154_v62 = vstv %s393_s1  ;;  %s592_s9 = sld [smem:[#allocation5 + $0x7]] }
  0x2b   :  { %v155_v63 = vmul.f32 %v154_v62, %v539_v0  ;;  %v157_v2 = vstv %s394_s30  ;;  %s595_s2 = sld [smem:[#allocation7 + $0x7]] }
  0x2c   :  { %v136_v3 = vmul.f32 %v135_v57, %v133_v60  ;;  %v147_v4 = vadd.f32 %v146_v58, %v144_v61  ;;  %v158_v5 = vmul.f32 %v544_v1, %v157_v2  ;;  %s401_s10 = sld [smem:[#allocation3 + $0x8]]  ;;  %v161_v7 = vstv %s584_s0 }
  0x2d   :  { %s402_s11 = sld [smem:[#allocation3 + $0x88]]  ;;  %v165_v17 = vstv %s587_s6 }
  0x2e   :  { %v137_v8 = vadd.f32 %v136_v3, %v122_v59  ;;  %v148_v9 = vmax.f32 %v147_v4, 0.0  ;;  %v159_v10 = vadd.f32 %v158_v5, %v155_v63  ;;  %v169_v11 = vstv %s397_s7  ;;  %s600_s12 = sld [smem:[#allocation5 + $0x8]] }
  0x2f   :  { %v170_v12 = vmul.f32 %v169_v11, %v539_v0  ;;  %v172_v13 = vstv %s398_s8  ;;  %s603_s13 = sld [smem:[#allocation7 + $0x8]] }
  0x30   :  { %v151_v14 = vmul.f32 %v150_v6, %v148_v9  ;;  %v162_v15 = vadd.f32 %v161_v7, %v159_v10  ;;  %v173_v16 = vmul.f32 %v544_v1, %v172_v13  ;;  %s405_s14 = sld [smem:[#allocation3 + $0x9]]  ;;  %v176_v18 = vstv %s592_s9 }
  0x31   :  { %s406_s15 = sld [smem:[#allocation3 + $0x89]]  ;;  %v180_v28 = vstv %s595_s2 }
  0x32   :  { %v152_v19 = vadd.f32 %v151_v14, %v137_v8  ;;  %v163_v20 = vmax.f32 %v162_v15, 0.0  ;;  %v174_v21 = vadd.f32 %v173_v16, %v170_v12  ;;  %v184_v22 = vstv %s401_s10  ;;  %s608_s16 = sld [smem:[#allocation5 + $0x9]] }
  0x33   :  { %v185_v23 = vmul.f32 %v184_v22, %v539_v0  ;;  %v187_v24 = vstv %s402_s11  ;;  %s611_s4 = sld [smem:[#allocation7 + $0x9]] }
  0x34   :  { %v166_v25 = vmul.f32 %v165_v17, %v163_v20  ;;  %v177_v26 = vadd.f32 %v176_v18, %v174_v21  ;;  %v188_v27 = vmul.f32 %v544_v1, %v187_v24  ;;  %s409_s17 = sld [smem:[#allocation3 + $0xa]]  ;;  %v191_v29 = vstv %s600_s12 }
  0x35   :  { %s410_s18 = sld [smem:[#allocation3 + $0x8a]]  ;;  %v195_v39 = vstv %s603_s13 }
  0x36   :  { %v167_v30 = vadd.f32 %v166_v25, %v152_v19  ;;  %v178_v31 = vmax.f32 %v177_v26, 0.0  ;;  %v189_v32 = vadd.f32 %v188_v27, %v185_v23  ;;  %v199_v33 = vstv %s405_s14  ;;  %s616_s19 = sld [smem:[#allocation5 + $0xa]] }
  0x37   :  { %v200_v34 = vmul.f32 %v199_v33, %v539_v0  ;;  %v202_v35 = vstv %s406_s15  ;;  %s619_s20 = sld [smem:[#allocation7 + $0xa]] }
  0x38   :  { %v181_v36 = vmul.f32 %v180_v28, %v178_v31  ;;  %v192_v37 = vadd.f32 %v191_v29, %v189_v32  ;;  %v203_v38 = vmul.f32 %v544_v1, %v202_v35  ;;  %s413_s21 = sld [smem:[#allocation3 + $0xb]]  ;;  %v206_v40 = vstv %s608_s16 }
  0x39   :  { %s414_s22 = sld [smem:[#allocation3 + $0x8b]]  ;;  %v210_v50 = vstv %s611_s4 }
  0x3a   :  { %v182_v41 = vadd.f32 %v181_v36, %v167_v30  ;;  %v193_v42 = vmax.f32 %v192_v37, 0.0  ;;  %v204_v43 = vadd.f32 %v203_v38, %v200_v34  ;;  %v214_v44 = vstv %s409_s17  ;;  %s624_s23 = sld [smem:[#allocation5 + $0xb]] }
  0x3b   :  { %v215_v45 = vmul.f32 %v214_v44, %v539_v0  ;;  %v217_v46 = vstv %s410_s18  ;;  %s627_s24 = sld [smem:[#allocation7 + $0xb]] }
  0x3c   :  { %v196_v47 = vmul.f32 %v195_v39, %v193_v42  ;;  %v207_v48 = vadd.f32 %v206_v40, %v204_v43  ;;  %v218_v49 = vmul.f32 %v544_v1, %v217_v46  ;;  %s417_s3 = sld [smem:[#allocation3 + $0xc]]  ;;  %v221_v51 = vstv %s616_s19 }
  0x3d   :  { %s418_s25 = sld [smem:[#allocation3 + $0x8c]]  ;;  %v225_v61 = vstv %s619_s20 }
  0x3e   :  { %v197_v52 = vadd.f32 %v196_v47, %v182_v41  ;;  %v208_v53 = vmax.f32 %v207_v48, 0.0  ;;  %v219_v54 = vadd.f32 %v218_v49, %v215_v45  ;;  %v229_v55 = vstv %s413_s21  ;;  %s632_s26 = sld [smem:[#allocation5 + $0xc]] }
  0x3f   :  { %v230_v56 = vmul.f32 %v229_v55, %v539_v0  ;;  %v232_v57 = vstv %s414_s22  ;;  %s635_s27 = sld [smem:[#allocation7 + $0xc]] }
  0x40   :  { %v211_v58 = vmul.f32 %v210_v50, %v208_v53  ;;  %v222_v59 = vadd.f32 %v221_v51, %v219_v54  ;;  %v233_v60 = vmul.f32 %v544_v1, %v232_v57  ;;  %s421_s28 = sld [smem:[#allocation3 + $0xd]]  ;;  %v236_v62 = vstv %s624_s23 }
  0x41   :  { %s422_s29 = sld [smem:[#allocation3 + $0x8d]]  ;;  %v240_v10 = vstv %s627_s24 }
  0x42   :  { %v212_v63 = vadd.f32 %v211_v58, %v197_v52  ;;  %v223_v2 = vmax.f32 %v222_v59, 0.0  ;;  %v234_v3 = vadd.f32 %v233_v60, %v230_v56  ;;  %v244_v4 = vstv %s417_s3  ;;  %s640_s1 = sld [smem:[#allocation5 + $0xd]] }
  0x43   :  { %v245_v5 = vmul.f32 %v244_v4, %v539_v0  ;;  %v247_v6 = vstv %s418_s25  ;;  %s643_s30 = sld [smem:[#allocation7 + $0xd]] }
  0x44   :  { %v226_v7 = vmul.f32 %v225_v61, %v223_v2  ;;  %v237_v8 = vadd.f32 %v236_v62, %v234_v3  ;;  %v248_v9 = vmul.f32 %v544_v1, %v247_v6  ;;  %s425_s0 = sld [smem:[#allocation3 + $0xe]]  ;;  %v251_v11 = vstv %s632_s26 }
  0x45   :  { %s426_s6 = sld [smem:[#allocation3 + $0x8e]]  ;;  %v255_v21 = vstv %s635_s27 }
  0x46   :  { %v227_v12 = vadd.f32 %v226_v7, %v212_v63  ;;  %v238_v13 = vmax.f32 %v237_v8, 0.0  ;;  %v249_v14 = vadd.f32 %v248_v9, %v245_v5  ;;  %v259_v15 = vstv %s421_s28  ;;  %s648_s7 = sld [smem:[#allocation5 + $0xe]] }
  0x47   :  { %v260_v16 = vmul.f32 %v259_v15, %v539_v0  ;;  %v262_v17 = vstv %s422_s29  ;;  %s651_s8 = sld [smem:[#allocation7 + $0xe]] }
  0x48   :  { %v241_v18 = vmul.f32 %v240_v10, %v238_v13  ;;  %v252_v19 = vadd.f32 %v251_v11, %v249_v14  ;;  %v263_v20 = vmul.f32 %v544_v1, %v262_v17  ;;  %s429_s9 = sld [smem:[#allocation3 + $0xf]]  ;;  %v266_v22 = vstv %s640_s1 }
  0x49   :  { %s430_s2 = sld [smem:[#allocation3 + $0x8f]]  ;;  %v270_v32 = vstv %s643_s30 }
  0x4a   :  { %v242_v23 = vadd.f32 %v241_v18, %v227_v12  ;;  %v253_v24 = vmax.f32 %v252_v19, 0.0  ;;  %v264_v25 = vadd.f32 %v263_v20, %v260_v16  ;;  %v274_v26 = vstv %s425_s0  ;;  %s656_s10 = sld [smem:[#allocation5 + $0xf]] }
  0x4b   :  { %v275_v27 = vmul.f32 %v274_v26, %v539_v0  ;;  %v277_v28 = vstv %s426_s6  ;;  %s659_s11 = sld [smem:[#allocation7 + $0xf]] }
  0x4c   :  { %v256_v29 = vmul.f32 %v255_v21, %v253_v24  ;;  %v267_v30 = vadd.f32 %v266_v22, %v264_v25  ;;  %v278_v31 = vmul.f32 %v544_v1, %v277_v28  ;;  %s433_s12 = sld [smem:[#allocation3 + $0x10]]  ;;  %v281_v33 = vstv %s648_s7 }
  0x4d   :  { %s434_s13 = sld [smem:[#allocation3 + $0x90]]  ;;  %v285_v43 = vstv %s651_s8 }
  0x4e   :  { %v257_v34 = vadd.f32 %v256_v29, %v242_v23  ;;  %v268_v35 = vmax.f32 %v267_v30, 0.0  ;;  %v279_v36 = vadd.f32 %v278_v31, %v275_v27  ;;  %v289_v37 = vstv %s429_s9  ;;  %s664_s14 = sld [smem:[#allocation5 + $0x10]] }
  0x4f   :  { %v290_v38 = vmul.f32 %v289_v37, %v539_v0  ;;  %v292_v39 = vstv %s430_s2  ;;  %s667_s15 = sld [smem:[#allocation7 + $0x10]] }
  0x50   :  { %v271_v40 = vmul.f32 %v270_v32, %v268_v35  ;;  %v282_v41 = vadd.f32 %v281_v33, %v279_v36  ;;  %v293_v42 = vmul.f32 %v544_v1, %v292_v39  ;;  %s437_s16 = sld [smem:[#allocation3 + $0x11]]  ;;  %v296_v44 = vstv %s656_s10 }
  0x51   :  { %s438_s4 = sld [smem:[#allocation3 + $0x91]]  ;;  %v300_v54 = vstv %s659_s11 }
  0x52   :  { %v272_v45 = vadd.f32 %v271_v40, %v257_v34  ;;  %v283_v46 = vmax.f32 %v282_v41, 0.0  ;;  %v294_v47 = vadd.f32 %v293_v42, %v290_v38  ;;  %v304_v48 = vstv %s433_s12  ;;  %s672_s17 = sld [smem:[#allocation5 + $0x11]] }
  0x53   :  { %v305_v49 = vmul.f32 %v304_v48, %v539_v0  ;;  %v307_v50 = vstv %s434_s13  ;;  %s675_s18 = sld [smem:[#allocation7 + $0x11]] }
  0x54   :  { %v286_v51 = vmul.f32 %v285_v43, %v283_v46  ;;  %v297_v52 = vadd.f32 %v296_v44, %v294_v47  ;;  %v308_v53 = vmul.f32 %v544_v1, %v307_v50  ;;  %s441_s19 = sld [smem:[#allocation3 + $0x12]]  ;;  %v311_v55 = vstv %s664_s14 }
  0x55   :  { %s442_s20 = sld [smem:[#allocation3 + $0x92]]  ;;  %v315_v3 = vstv %s667_s15 }
  0x56   :  { %v287_v56 = vadd.f32 %v286_v51, %v272_v45  ;;  %v298_v57 = vmax.f32 %v297_v52, 0.0  ;;  %v309_v58 = vadd.f32 %v308_v53, %v305_v49  ;;  %v319_v59 = vstv %s437_s16  ;;  %s680_s21 = sld [smem:[#allocation5 + $0x12]] }
  0x57   :  { %v320_v60 = vmul.f32 %v319_v59, %v539_v0  ;;  %v322_v61 = vstv %s438_s4  ;;  %s683_s22 = sld [smem:[#allocation7 + $0x12]] }
  0x58   :  { %v301_v62 = vmul.f32 %v300_v54, %v298_v57  ;;  %v312_v63 = vadd.f32 %v311_v55, %v309_v58  ;;  %v323_v2 = vmul.f32 %v544_v1, %v322_v61  ;;  %s445_s23 = sld [smem:[#allocation3 + $0x13]]  ;;  %v326_v4 = vstv %s672_s17 }
  0x59   :  { %s446_s24 = sld [smem:[#allocation3 + $0x93]]  ;;  %v330_v14 = vstv %s675_s18 }
  0x5a   :  { %v302_v5 = vadd.f32 %v301_v62, %v287_v56  ;;  %v313_v6 = vmax.f32 %v312_v63, 0.0  ;;  %v324_v7 = vadd.f32 %v323_v2, %v320_v60  ;;  %v334_v8 = vstv %s441_s19  ;;  %s447_s3 = sld [smem:[#allocation5 + $0x13]] }
  0x5b   :  { %v335_v9 = vmul.f32 %v334_v8, %v539_v0  ;;  %v337_v10 = vstv %s442_s20  ;;  %s448_s25 = sld [smem:[#allocation7 + $0x13]] }
  0x5c   :  { %v316_v11 = vmul.f32 %v315_v3, %v313_v6  ;;  %v327_v12 = vadd.f32 %v326_v4, %v324_v7  ;;  %v338_v13 = vmul.f32 %v544_v1, %v337_v10  ;;  %v341_v15 = vstv %s680_s21 }
  0x5d   :  { %v345_v25 = vstv %s683_s22 }
  0x5e   :  { %v317_v16 = vadd.f32 %v316_v11, %v302_v5  ;;  %v328_v17 = vmax.f32 %v327_v12, 0.0  ;;  %v339_v18 = vadd.f32 %v338_v13, %v335_v9  ;;  %v349_v19 = vstv %s445_s23 }
  0x5f   :  { %v350_v20 = vmul.f32 %v349_v19, %v539_v0  ;;  %v352_v21 = vstv %s446_s24 }
  0x60   :  { %v331_v22 = vmul.f32 %v330_v14, %v328_v17  ;;  %v342_v23 = vadd.f32 %v341_v15, %v339_v18  ;;  %v353_v24 = vmul.f32 %v544_v1, %v352_v21  ;;  %v356_v26 = vstv %s447_s3 }
  0x61   :  { %v360_v32 = vstv %s448_s25 }
  0x62   :  { %v332_v27 = vadd.f32 %v331_v22, %v317_v16  ;;  %v343_v28 = vmax.f32 %v342_v23, 0.0  ;;  %v354_v29 = vadd.f32 %v353_v24, %v350_v20 }
  0x64   :  { %v346_v30 = vmul.f32 %v345_v25, %v343_v28  ;;  %v357_v31 = vadd.f32 %v356_v26, %v354_v29 }
  0x66   :  { %v347_v33 = vadd.f32 %v346_v30, %v332_v27  ;;  %v358_v34 = vmax.f32 %v357_v31, 0.0 }
  0x68   :  { %v361_v35 = vmul.f32 %v360_v32, %v358_v34 }
  0x6a   :  { %v362_v36 = vadd.f32 %v361_v35, %v347_v33 }
  0x6c   :  { %363 = vst [vmem:[%s703_s5] sm:$0xff] %v362_v36 }
  0x6d   :  { %368 = vsyncpa [#allocation4], 1 }
  0x6e   :  { %369 = vsyncpa [#allocation6], 1 }

</bundles_post_ra>
